<compile_context>
chip_gen: v5e
topology: v5e:2x2
jax: 0.10.0
libtpu: 0.0.40
codegen_flags: <defaults>
</compile_context>

<pallas_src>
import jax
import jax.numpy as jnp
from jax.experimental import pallas as pl
from jax.experimental.pallas import tpu as pltpu

_EPS = 1e-5  # nn.LayerNorm default


def _cnn_layernorm_kernel(x_ref, g_ref, b_ref, o_ref):
    # x_ref: (tile_bc, F, tile_t); g_ref/b_ref: (1, F, 1)
    x = x_ref[...].astype(jnp.float32)
    inv_f = jnp.float32(1.0 / x.shape[1])
    # One-pass statistics over the F (sublane) axis: sum and sum of squares.
    mean = jnp.sum(x, axis=1, keepdims=True) * inv_f
    mean_sq = jnp.sum(x * x, axis=1, keepdims=True) * inv_f
    var = mean_sq - mean * mean
    inv_std = jax.lax.rsqrt(var + _EPS)
    g = g_ref[...].astype(jnp.float32)
    b = b_ref[...].astype(jnp.float32)
    o_ref[...] = ((x - mean) * inv_std * g + b).astype(o_ref.dtype)


def _chip_budgets():
    """Per-generation (block_target_bytes, vmem_limit_bytes)."""
    vmem_cap = 128 * 1024 * 1024
    try:
        vmem_cap = int(pltpu.get_tpu_info().vmem_capacity_bytes)
    except Exception:
        pass
    if vmem_cap <= 64 * 1024 * 1024:
        # v7x: only 64 MiB VMEM per TC but ~3.2 TB/s HBM -> bigger blocks to
        # amortize the ~0.35 us per-step overhead; keep the limit <= 48 MiB.
        return 6 * 1024 * 1024, 48 * 1024 * 1024
    # v5e / v6e: 128 MiB physical VMEM. ~4 MiB blocks sit at >=85% of the HBM
    # roofline on both; raise the scoped limit well above the 16/32 MiB default.
    return 4 * 1024 * 1024, 64 * 1024 * 1024


def _choose_tiles(bc, f, t, itemsize, target):
    """Pick (tile_bc, tile_t); the block is (tile_bc, F, tile_t). F never tiled."""
    row_bytes = f * t * itemsize              # one full (F, T) slice, input dtype
    total = bc * row_bytes
    min_split = 512 * 1024

    if total <= target:
        # Whole slab fits in one block. If it is big enough to matter, still
        # split it in two along a "parallel" axis: feeds v7x's 2 TensorCores
        # and keeps DMA/compute pipelining alive (grid (1,1) would serialize).
        if total > min_split:
            if bc >= 2:
                return pl.cdiv(bc, 2), t
            if t >= 256:
                tile_t = max(128, (pl.cdiv(t, 2) // 128) * 128)
                return bc, tile_t
        return bc, t

    # General path: keep full T when a single (F, T) slice fits (or T is too
    # small to split on 128-lane boundaries); otherwise tile T lane-aligned.
    if row_bytes <= target or t <= 128:
        tile_t = t
    else:
        tile_t = max(128, ((target // (f * itemsize)) // 128) * 128)
        tile_t = min(tile_t, max(128, (t // 128) * 128))
    per_bc = f * tile_t * itemsize
    tile_bc = int(max(1, min(bc, target // max(1, per_bc))))
    return tile_bc, tile_t


def _layernorm_feature_sublane(x3, gamma, beta):
    """x3: (B*C, F, T); LayerNorm over F with affine gamma/beta of shape (F,)."""
    bc, f, t = x3.shape
    target, vmem_limit = _chip_budgets()
    tile_bc, tile_t = _choose_tiles(bc, f, t, x3.dtype.itemsize, target)
    g3 = gamma.reshape(1, f, 1)
    b3 = beta.reshape(1, f, 1)
    grid = (pl.cdiv(bc, tile_bc), pl.cdiv(t, tile_t))

    n = bc * f * t
    cost = pl.CostEstimate(
        flops=8 * n,                         # sum, sq-sum, center, scale, shift
        transcendentals=bc * t,              # one rsqrt per (bc, t) column
        bytes_accessed=2 * n * x3.dtype.itemsize
        + 2 * f * gamma.dtype.itemsize,
    )

    return pl.pallas_call(
        _cnn_layernorm_kernel,
        out_shape=jax.ShapeDtypeStruct((bc, f, t), x3.dtype),
        grid_spec=pltpu.PrefetchScalarGridSpec(
            num_scalar_prefetch=0,
            grid=grid,
            in_specs=[
                pl.BlockSpec((tile_bc, f, tile_t), lambda i, j: (i, 0, j)),
                pl.BlockSpec((1, f, 1), lambda i, j: (0, 0, 0)),
                pl.BlockSpec((1, f, 1), lambda i, j: (0, 0, 0)),
            ],
            out_specs=pl.BlockSpec((tile_bc, f, tile_t), lambda i, j: (i, 0, j)),
        ),
        compiler_params=pltpu.CompilerParams(
            dimension_semantics=("parallel", "parallel"),
            vmem_limit_bytes=vmem_limit,
        ),
        cost_estimate=cost,
    )(x3, g3, b3)


def cnn_layer_norm(x, gamma, beta):
    """x: (batch, channel, n_features, time) NCHW. Returns same shape/dtype.

    Equivalent to: x.transpose(2,3) -> nn.LayerNorm(n_features) -> transpose(2,3),
    computed without any physical transpose (normalization runs over the
    feature/sublane axis with time kept lane-dense).
    """
    B, C, F, T = x.shape
    x3 = x.reshape(B * C, F, T)          # pure reshape: no data movement
    y3 = _layernorm_feature_sublane(x3, gamma, beta)
    return y3.reshape(B, C, F, T)


if __name__ == "__main__":
    key = jax.random.PRNGKey(0)
    kx, kg, kb = jax.random.split(key, 3)

    batch, channels, n_features, time = 2, 4, 32, 16
    x = jax.random.normal(kx, (batch, channels, n_features, time), dtype=jnp.float32)

    # nn.LayerNorm default init is ones/zeros; perturb deterministically so the
    # affine path is actually exercised.
    gamma = 1.0 + 0.1 * jax.random.normal(kg, (n_features,), dtype=jnp.float32)
    beta = 0.1 * jax.random.normal(kb, (n_features,), dtype=jnp.float32)

    out = jax.block_until_ready(cnn_layer_norm(x, gamma, beta))

    # Pure-JAX reference: LayerNorm over the n_features axis (axis=2).
    mean = jnp.mean(x, axis=2, keepdims=True)
    var = jnp.mean((x - mean) ** 2, axis=2, keepdims=True)
    ref = (x - mean) * jax.lax.rsqrt(var + _EPS)
    ref = ref * gamma[None, None, :, None] + beta[None, None, :, None]

    assert out.shape == x.shape and out.dtype == x.dtype
    assert jnp.max(jnp.abs(out - ref)) < 2e-5

    print("KERNEL_OK")
</pallas_src>

<mosaic_0001>
module attributes {stable_mosaic.version = 11 : i64} {
  func.func @_cnn_layernorm_kernel(%arg0: i32, %arg1: i32, %arg2: memref<8x32x16xf32, #tpu.memory_space<vmem>>, %arg3: memref<1x32x1xf32, #tpu.memory_space<vmem>>, %arg4: memref<1x32x1xf32, #tpu.memory_space<vmem>>, %arg5: memref<8x32x16xf32, #tpu.memory_space<vmem>>) attributes {dimension_semantics = [#tpu.dimension_semantics<parallel>, #tpu.dimension_semantics<parallel>], iteration_bounds = array<i64: 1, 1>, scalar_prefetch = 0 : i64, scratch_operands = 0 : i64, tpu.core_type = #tpu.core_type<tc>, window_params = [{transform_indices = @transform_0, window_bounds = array<i64: 8, 32, 16>}, {pipeline_mode = #tpu.pipeline_mode<synchronous>, transform_indices = @transform_1, window_bounds = array<i64: 1, 32, 1>}, {pipeline_mode = #tpu.pipeline_mode<synchronous>, transform_indices = @transform_2, window_bounds = array<i64: 1, 32, 1>}, {transform_indices = @transform_3, window_bounds = array<i64: 8, 32, 16>}]} {
    %c0 = arith.constant 0 : index
    %c0_0 = arith.constant 0 : index
    %c0_1 = arith.constant 0 : index
    %0 = vector.load %arg2[%c0, %c0_0, %c0_1] : memref<8x32x16xf32, #tpu.memory_space<vmem>>, vector<8x32x16xf32>
    %cst = arith.constant dense<0.000000e+00> : vector<8x16xf32>
    %1 = vector.multi_reduction <add>, %0, %cst [1] : vector<8x32x16xf32> to vector<8x16xf32>
    %2 = vector.shape_cast %1 : vector<8x16xf32> to vector<8x1x16xf32>
    %cst_2 = arith.constant 3.125000e-02 : f32
    %3 = vector.broadcast %cst_2 : f32 to vector<8x1x16xf32>
    %4 = arith.mulf %2, %3 : vector<8x1x16xf32>
    %5 = arith.mulf %0, %0 : vector<8x32x16xf32>
    %cst_3 = arith.constant dense<0.000000e+00> : vector<8x16xf32>
    %6 = vector.multi_reduction <add>, %5, %cst_3 [1] : vector<8x32x16xf32> to vector<8x16xf32>
    %7 = vector.shape_cast %6 : vector<8x16xf32> to vector<8x1x16xf32>
    %cst_4 = arith.constant 3.125000e-02 : f32
    %8 = vector.broadcast %cst_4 : f32 to vector<8x1x16xf32>
    %9 = arith.mulf %7, %8 : vector<8x1x16xf32>
    %10 = arith.mulf %4, %4 : vector<8x1x16xf32>
    %11 = arith.subf %9, %10 : vector<8x1x16xf32>
    %cst_5 = arith.constant 9.99999974E-6 : f32
    %12 = vector.broadcast %cst_5 : f32 to vector<8x1x16xf32>
    %13 = arith.addf %11, %12 : vector<8x1x16xf32>
    %14 = math.rsqrt %13 : vector<8x1x16xf32>
    %c0_6 = arith.constant 0 : index
    %c0_7 = arith.constant 0 : index
    %c0_8 = arith.constant 0 : index
    %15 = vector.load %arg3[%c0_6, %c0_7, %c0_8] : memref<1x32x1xf32, #tpu.memory_space<vmem>>, vector<1x32x1xf32>
    %c0_9 = arith.constant 0 : index
    %c0_10 = arith.constant 0 : index
    %c0_11 = arith.constant 0 : index
    %16 = vector.load %arg4[%c0_9, %c0_10, %c0_11] : memref<1x32x1xf32, #tpu.memory_space<vmem>>, vector<1x32x1xf32>
    %17 = vector.broadcast %4 : vector<8x1x16xf32> to vector<8x32x16xf32>
    %18 = arith.subf %0, %17 : vector<8x32x16xf32>
    %19 = vector.broadcast %14 : vector<8x1x16xf32> to vector<8x32x16xf32>
    %20 = arith.mulf %18, %19 : vector<8x32x16xf32>
    %21 = vector.broadcast %15 : vector<1x32x1xf32> to vector<8x32x16xf32>
    %22 = arith.mulf %20, %21 : vector<8x32x16xf32>
    %23 = vector.broadcast %16 : vector<1x32x1xf32> to vector<8x32x16xf32>
    %24 = arith.addf %22, %23 : vector<8x32x16xf32>
    %c0_12 = arith.constant 0 : index
    %c0_13 = arith.constant 0 : index
    %c0_14 = arith.constant 0 : index
    %25 = vector.load %arg5[%c0_12, %c0_13, %c0_14] : memref<8x32x16xf32, #tpu.memory_space<vmem>>, vector<8x32x16xf32>
    tpu.vector_store %arg5[%c0_12, %c0_13, %c0_14], %24 {strides = array<i32>} : memref<8x32x16xf32, #tpu.memory_space<vmem>>, vector<8x32x16xf32>,
    return
  }
  func.func @transform_0(%arg0: i32, %arg1: i32) -> (i32, i32, i32) {
    %c0_i32 = arith.constant 0 : i32
    %c0_i32_0 = arith.constant 0 : i32
    return %arg0, %c0_i32, %arg1 : i32, i32, i32
  }
  func.func @transform_1(%arg0: i32, %arg1: i32) -> (i32, i32, i32) {
    %c0_i32 = arith.constant 0 : i32
    %c0_i32_0 = arith.constant 0 : i32
    %c0_i32_1 = arith.constant 0 : i32
    %c0_i32_2 = arith.constant 0 : i32
    return %c0_i32, %c0_i32_0, %c0_i32_1 : i32, i32, i32
  }
  func.func @transform_2(%arg0: i32, %arg1: i32) -> (i32, i32, i32) {
    %c0_i32 = arith.constant 0 : i32
    %c0_i32_0 = arith.constant 0 : i32
    %c0_i32_1 = arith.constant 0 : i32
    %c0_i32_2 = arith.constant 0 : i32
    return %c0_i32, %c0_i32_0, %c0_i32_1 : i32, i32, i32
  }
  func.func @transform_3(%arg0: i32, %arg1: i32) -> (i32, i32, i32) {
    %c0_i32 = arith.constant 0 : i32
    %c0_i32_0 = arith.constant 0 : i32
    return %arg0, %c0_i32, %arg1 : i32, i32, i32
  }
}

</mosaic_0001>

<bundles_post_ra>
// kernel: tpu_custom_call.1
= control target key start
LH: loop header
LB: loop body
LE: loop exit
PB: predicated region body
PF: predicated region fallthrough
CT: control target
= control target key end

     0   :  { %v639_v0 = vmov 0   ;;  %vm1453_vm0 = vcmask 130048   ;;  %s1429_s1 = inlined_call_operand.vmem [shape: f32[1,32,1], index: 1, kind: input, shape index: {}]   ;;  %s1430_s2 = inlined_call_operand.vmem [shape: f32[1,32,1], index: 2, kind: input, shape index: {}]   ;;  %s1431_s0 = inlined_call_operand.vmem [shape: f32[8,32,16], index: 0, kind: input, shape index: {}]   ;;  %s1432_s3 = inlined_call_operand.vmem [shape: f32[8,32,16], index: 3, kind: output, shape index: {}]  }
   0x1   :  { %621 = vset.pattern.permute.xlu1 %v639_v0  ;;  %620 = vset.pattern.permute.xlu0 %v639_v0  ;;  %v409_v1 = vld [vmem:[%s1429_s1 + $0x10] sm:$0xff]  ;;  %v407_v2 = vld [vmem:[%s1429_s1] sm:$0xff]  ;;  %v410_v4 = vld [vmem:[%s1429_s1 + $0x18] sm:$0xff] }
   0x2   :  { %491 = vperm.xlu1 %621, %v409_v1   ;;  %481 = vperm.xlu0 %620, %v407_v2   ;;  %v411_v3 = vld [vmem:[%s1430_s2] sm:$0xff]  ;;  %v408_v5 = vld [vmem:[%s1429_s1 + $0x8] sm:$0xff]  ;;  %v414_v7 = vld [vmem:[%s1430_s2 + $0x18] sm:$0xff] }
   0x3   :  { %622 = vset.pattern.permute.xlu2 %v639_v0  ;;  %v412_v6 = vld [vmem:[%s1430_s2 + $0x8] sm:$0xff]  ;;  %v413_v8 = vld [vmem:[%s1430_s2 + $0x10] sm:$0xff]  ;;  %v687_v9 = vld [vmem:[%s1431_s0] sm:$0xff] }
   0x4   :  { %533 = vperm.xlu2 %622, %v411_v3   ;;  %v692_v10 = vld [vmem:[%s1431_s0 + $0x8] sm:$0xff]  ;;  %v697_v11 = vld [vmem:[%s1431_s0 + $0x20] sm:$0xff]  ;;  %v47_v15 = vsel %vm1453_vm0, %v687_v9, 0.0  ;;  %v723_v18 = vld [vmem:[%s1431_s0 + $0x10] sm:$0xff] }
   0x5   :  { %v702_v12 = vld [vmem:[%s1431_s0 + $0x28] sm:$0xff]  ;;  %v707_v13 = vld [vmem:[%s1431_s0 + $0x40] sm:$0xff]  ;;  %v48_v16 = vsel %vm1453_vm0, %v692_v10, 0.0  ;;  %v60_v17 = vsel %vm1453_vm0, %v697_v11, 0.0  ;;  %1454 = vst [vmem:[#allocation2_spill] sm:$0xff] %v723_v18  ;;  %v728_v19 = vld [vmem:[%s1431_s0 + $0x30] sm:$0xff] }
   0x6   :  { %v712_v14 = vld [vmem:[%s1431_s0 + $0x48] sm:$0xff]  ;;  %1455 = vst [vmem:[#allocation3_spill] sm:$0xff] %v728_v19  ;;  %v733_v20 = vld [vmem:[%s1431_s0 + $0x50] sm:$0xff]  ;;  %v49_v21 = vadd.f32 %v48_v16, %v47_v15  ;;  %v61_v22 = vsel %vm1453_vm0, %v702_v12, 0.0  ;;  %v73_v23 = vsel %vm1453_vm0, %v707_v13, 0.0  ;;  %v744_v25 = vld [vmem:[%s1431_s0 + $0x60] sm:$0xff] }
   0x7   :  { %1456 = vst [vmem:[#allocation4_spill] sm:$0xff] %v733_v20  ;;  %v74_v24 = vsel %vm1453_vm0, %v712_v14, 0.0  ;;  %v749_v26 = vld [vmem:[%s1431_s0 + $0x68] sm:$0xff]  ;;  %v754_v27 = vld [vmem:[%s1431_s0 + $0x70] sm:$0xff]  ;;  %v50_v28 = vsel %vm1453_vm0, %v723_v18, 0.0  ;;  %v62_v29 = vadd.f32 %v61_v22, %v60_v17  ;;  %v63_v30 = vsel %vm1453_vm0, %v728_v19, 0.0 }
   0x8   :  { %1457 = vst [vmem:[#allocation5_spill] sm:$0xff] %v754_v27  ;;  %v75_v31 = vadd.f32 %v74_v24, %v73_v23  ;;  %v763_v32 = vld [vmem:[%s1431_s0 + $0x18] sm:$0xff]  ;;  %v51_v35 = vadd.f32 %v50_v28, %v49_v21  ;;  %v76_v36 = vsel %vm1453_vm0, %v733_v20, 0.0  ;;  %v86_v37 = vsel %vm1453_vm0, %v744_v25, 0.0  ;;  %v789_v40 = vld [vmem:[%s1431_s0 + $0x80] sm:$0xff]  ;;  %v794_v41 = vld [vmem:[%s1431_s0 + $0x88] sm:$0xff] }
   0x9   :  { %1458 = vst [vmem:[#allocation6_spill] sm:$0xff] %v763_v32  ;;  %v768_v33 = vld [vmem:[%s1431_s0 + $0x38] sm:$0xff]  ;;  %v87_v38 = vsel %vm1453_vm0, %v749_v26, 0.0  ;;  %v52_v42 = vsel %vm1453_vm0, %v763_v32, 0.0  ;;  %v64_v43 = vadd.f32 %v63_v30, %v62_v29  ;;  %v803_v46 = vld [vmem:[%s1431_s0 + $0x90] sm:$0xff]  ;;  %v89_v51 = vsel %vm1453_vm0, %v754_v27, 0.0 }
   0xa   :  { %496 = vperm.xlu1 %621, %v410_v4   ;;  %486 = vperm.xlu0 %620, %v408_v5   ;;  %1459 = vst [vmem:[#allocation7_spill] sm:$0xff] %v768_v33  ;;  %v773_v34 = vld [vmem:[%s1431_s0 + $0x58] sm:$0xff]  ;;  %v65_v44 = vsel %vm1453_vm0, %v768_v33, 0.0  ;;  %v77_v45 = vadd.f32 %v76_v36, %v75_v31  ;;  %v53_v48 = vadd.f32 %v52_v42, %v51_v35  ;;  %v817_v52 = vld [vmem:[%s1431_s0 + $0xa0] sm:$0xff]  ;;  %v822_v53 = vld [vmem:[%s1431_s0 + $0xa8] sm:$0xff]  ;;  %v99_v57 = vsel %vm1453_vm0, %v789_v40, 0.0 }
   0xb   :  { %1460 = vst [vmem:[#allocation8_spill] sm:$0xff] %v773_v34  ;;  %v784_v39 = vld [vmem:[%s1431_s0 + $0x78] sm:$0xff]  ;;  %v78_v49 = vsel %vm1453_vm0, %v773_v34, 0.0  ;;  %v88_v50 = vadd.f32 %v87_v38, %v86_v37  ;;  %v66_v54 = vadd.f32 %v65_v44, %v64_v43  ;;  %v100_v60 = vsel %vm1453_vm0, %v794_v41, 0.0  ;;  %v835_v62 = vld [vmem:[%s1431_s0 + $0xb0] sm:$0xff]  ;;  %v856_v15 = vld [vmem:[%s1431_s0 + $0xc8] sm:$0xff] }
   0xc   :  { %538 = vperm.xlu2 %622, %v412_v6   ;;  %1461 = vst [vmem:[#allocation9_spill] sm:$0xff] %v784_v39  ;;  %v808_v47 = vld [vmem:[%s1431_s0 + $0x98] sm:$0xff]  ;;  %v79_v55 = vadd.f32 %v78_v49, %v77_v45  ;;  %v91_v56 = vsel %vm1453_vm0, %v784_v39, 0.0  ;;  %v54_v58 = vrot.slane %v53_v48, 4  ;;  %v102_v61 = vsel %vm1453_vm0, %v803_v46, 0.0  ;;  %v865_v30 = vld [vmem:[%s1431_s0 + $0xd0] sm:$0xff] }
   0xd   :  { %1462 = vst [vmem:[#allocation10_spill] sm:$0xff] %v794_v41  ;;  %v90_v59 = vadd.f32 %v89_v51, %v88_v50  ;;  %v840_v63 = vld [vmem:[%s1431_s0 + $0xb8] sm:$0xff]  ;;  %v67_v0 = vrot.slane %v66_v54, 4  ;;  %v101_v2 = vadd.f32 %v100_v60, %v99_v57  ;;  %v104_v3 = vsel %vm1453_vm0, %v808_v47, 0.0 }
   0xe   :  { %1463 = vst [vmem:[#allocation11_spill] sm:$0xff] %v803_v46  ;;  %v80_v1 = vrot.slane %v79_v55, 4  ;;  %v55_v4 = vadd.f32 %v54_v58, %v53_v48  ;;  %v112_v6 = vsel %vm1453_vm0, %v817_v52, 0.0  ;;  %v115_v28 = vsel %vm1453_vm0, %v835_v62, 0.0  ;;  %v874_v45 = vld [vmem:[%s1431_s0 + $0xd8] sm:$0xff]  ;;  %v881_v58 = vld [vmem:[%s1431_s0 + $0xe0] sm:$0xff] }
   0xf   :  { %1464 = vst [vmem:[#allocation12_spill] sm:$0xff] %v808_v47  ;;  %v92_v5 = vadd.f32 %v91_v56, %v90_v59  ;;  %v68_v16 = vadd.f32 %v67_v0, %v66_v54  ;;  %v103_v21 = vadd.f32 %v102_v61, %v101_v2  ;;  %v117_v29 = vsel %vm1453_vm0, %v840_v63, 0.0  ;;  %v886_v59 = vld [vmem:[%s1431_s0 + $0xe8] sm:$0xff]  ;;  %v891_v2 = vld [vmem:[%s1431_s0 + $0xf0] sm:$0xff] }
  0x10   :  { %1465 = vst [vmem:[#allocation13_spill] sm:$0xff] %v822_v53  ;;  %v81_v17 = vadd.f32 %v80_v1, %v79_v55  ;;  %v56_v23 = vrot.slane %v55_v4, 2  ;;  %v126_v44 = vsel %vm1453_vm0, %v856_v15, 0.0  ;;  %v128_v57 = vsel %vm1453_vm0, %v865_v30, 0.0 }
  0x11   :  { %1466 = vst [vmem:[#allocation14_spill] sm:$0xff] %v835_v62  ;;  %v93_v24 = vrot.slane %v92_v5, 4  ;;  %v69_v31 = vrot.slane %v68_v16, 2  ;;  %v105_v36 = vadd.f32 %v104_v3, %v103_v21 }
  0x12   :  { %548 = vperm.xlu1 %621, %v414_v7   ;;  %543 = vperm.xlu0 %620, %v413_v8   ;;  %1467 = vst [vmem:[#allocation15_spill] sm:$0xff] %v840_v63  ;;  %v113_v7 = vsel %vm1453_vm0, %v822_v53, 0.0  ;;  %v851_v8 = vld [vmem:[%s1431_s0 + $0xc0] sm:$0xff]  ;;  %v82_v35 = vrot.slane %v81_v17, 2  ;;  %v57_v38 = vadd.f32 %v56_v23, %v55_v4 }
  0x13   :  { %1468 = vst [vmem:[#allocation16_spill] sm:$0xff] %v856_v15  ;;  %v114_v22 = vadd.f32 %v113_v7, %v112_v6  ;;  %v94_v42 = vadd.f32 %v93_v24, %v92_v5  ;;  %v125_v43 = vsel %vm1453_vm0, %v851_v8, 0.0  ;;  %v70_v48 = vadd.f32 %v69_v31, %v68_v16  ;;  %v898_v7 = vld [vmem:[%s1431_s0 + $0xf8] sm:$0xff] }
  0x14   :  { %1469 = vst [vmem:[#allocation17_spill] sm:$0xff] %v865_v30  ;;  %v83_v49 = vadd.f32 %v82_v35, %v81_v17  ;;  %v106_v50 = vrot.slane %v105_v36, 4  ;;  %v58_v54 = vrot.slane %v57_v38, 1  ;;  %v127_v56 = vadd.f32 %v126_v44, %v125_v43 }
  0x15   :  { %v116_v37 = vadd.f32 %v115_v28, %v114_v22  ;;  %1470 = vst [vmem:[#allocation18_spill] sm:$0xff] %v874_v45  ;;  %v95_v55 = vrot.slane %v94_v42, 2  ;;  %v71_v60 = vrot.slane %v70_v48, 1  ;;  %v130_v6 = vsel %vm1453_vm0, %v874_v45, 0.0 }
  0x16   :  { %1471 = vst [vmem:[#allocation19_spill] sm:$0xff] %v886_v59  ;;  %v84_v61 = vrot.slane %v83_v49, 1  ;;  %v107_v0 = vadd.f32 %v106_v50, %v105_v36  ;;  %v59_v3 = vadd.f32 %v58_v54, %v57_v38  ;;  %v129_v5 = vadd.f32 %v128_v57, %v127_v56 }
  0x17   :  { %v118_v51 = vadd.f32 %v117_v29, %v116_v37  ;;  %1472 = vst [vmem:[#allocation20_spill] sm:$0xff] %v891_v2  ;;  %v96_v4 = vadd.f32 %v95_v55, %v94_v42  ;;  %v72_v16 = vadd.f32 %v71_v60, %v70_v48  ;;  %v138_v28 = vsel %vm1453_vm0, %v881_v58, 0.0 }
  0x18   :  { %1473 = vst [vmem:[#allocation21_spill] sm:$0xff] %v898_v7  ;;  %v85_v17 = vadd.f32 %v84_v61, %v83_v49  ;;  %v108_v21 = vrot.slane %v107_v0, 2  ;;  %v131_v24 = vadd.f32 %v130_v6, %v129_v5  ;;  %v139_v29 = vsel %vm1453_vm0, %v886_v59, 0.0 }
  0x19   :  { %v119_v1 = vrot.slane %v118_v51, 4  ;;  %v97_v23 = vrot.slane %v96_v4, 1  ;;  %v140_v36 = vadd.f32 %v139_v29, %v138_v28  ;;  %v141_v37 = vsel %vm1453_vm0, %v891_v2, 0.0 }
  0x1a   :  { %v109_v31 = vadd.f32 %v108_v21, %v107_v0  ;;  %v132_v42 = vrot.slane %v131_v24, 4  ;;  %v143_v43 = vsel %vm1453_vm0, %v898_v7, 0.0  ;;  %v159_v44 = vmul.f32 %v687_v9, %v687_v9 }
  0x1b   :  { %v120_v22 = vadd.f32 %v119_v1, %v118_v51  ;;  %v98_v38 = vadd.f32 %v97_v23, %v96_v4  ;;  %v142_v50 = vadd.f32 %v141_v37, %v140_v36  ;;  %v910_v51 = vmul.f32 0.03125, %v59_v3 }
  0x1c   :  { %v110_v48 = vrot.slane %v109_v31, 1  ;;  %v133_v54 = vadd.f32 %v132_v42, %v131_v24  ;;  %v912_v55 = vmul.f32 0.03125, %v72_v16  ;;  %v914_v56 = vmul.f32 0.03125, %v85_v17 }
  0x1d   :  { %v121_v35 = vrot.slane %v120_v22, 2  ;;  %v916_v57 = vmul.f32 0.03125, %v98_v38  ;;  %v144_v0 = vadd.f32 %v143_v43, %v142_v50  ;;  %v160_v1 = vmul.f32 %v692_v10, %v692_v10 }
  0x1e   :  { %v111_v60 = vadd.f32 %v110_v48, %v109_v31  ;;  %v134_v4 = vrot.slane %v133_v54, 2  ;;  %v161_v5 = vmul.f32 %v723_v18, %v723_v18  ;;  %v162_v3 = vmul.f32 %v763_v32, %v763_v32 }
  0x1f   :  { %v122_v49 = vadd.f32 %v121_v35, %v120_v22  ;;  %v163_v6 = vmul.f32 %v697_v11, %v697_v11  ;;  %v145_v17 = vrot.slane %v144_v0, 4  ;;  %v164_v22 = vmul.f32 %v702_v12, %v702_v12 }
  0x20   :  { %v926_v21 = vmul.f32 0.03125, %v111_v60  ;;  %v135_v23 = vadd.f32 %v134_v4, %v133_v54  ;;  %v165_v24 = vmul.f32 %v728_v19, %v728_v19  ;;  %v166_v28 = vmul.f32 %v768_v33, %v768_v33 }
  0x21   :  { %v123_v61 = vrot.slane %v122_v49, 1  ;;  %v167_v29 = vmul.f32 %v707_v13, %v707_v13  ;;  %v146_v31 = vadd.f32 %v145_v17, %v144_v0  ;;  %v168_v36 = vmul.f32 %v712_v14, %v712_v14 }
  0x22   :  { %v169_v37 = vmul.f32 %v733_v20, %v733_v20  ;;  %v136_v38 = vrot.slane %v135_v23, 1  ;;  %v170_v42 = vmul.f32 %v773_v34, %v773_v34  ;;  %v171_v43 = vmul.f32 %v744_v25, %v744_v25 }
  0x23   :  { %v124_v16 = vadd.f32 %v123_v61, %v122_v49  ;;  %v172_v48 = vmul.f32 %v749_v26, %v749_v26  ;;  %v147_v49 = vrot.slane %v146_v31, 2  ;;  %v173_v50 = vmul.f32 %v754_v27, %v754_v27 }
  0x24   :  { %v174_v54 = vmul.f32 %v784_v39, %v784_v39  ;;  %v175_v60 = vmul.f32 %v789_v40, %v789_v40  ;;  %v137_v61 = vadd.f32 %v136_v38, %v135_v23  ;;  %v176_v0 = vmul.f32 %v794_v41, %v794_v41 }
  0x25   :  { %v936_v35 = vmul.f32 0.03125, %v124_v16  ;;  %v177_v4 = vmul.f32 %v803_v46, %v803_v46  ;;  %v178_v16 = vmul.f32 %v808_v47, %v808_v47  ;;  %v148_v17 = vadd.f32 %v147_v49, %v146_v31 }
  0x26   :  { %v179_v27 = vmul.f32 %v817_v52, %v817_v52  ;;  %v180_v20 = vmul.f32 %v822_v53, %v822_v53  ;;  %v181_v19 = vmul.f32 %v835_v62, %v835_v62  ;;  %v966_v23 = vmul.f32 0.03125, %v137_v61 }
  0x27   :  { %v182_v38 = vmul.f32 %v840_v63, %v840_v63  ;;  %v183_v46 = vmul.f32 %v851_v8, %v851_v8  ;;  %v974_v31 = vmul.f32 %v856_v15, %v856_v15  ;;  %v149_v49 = vrot.slane %v148_v17, 1 }
  0x28   :  { %v185_v18 = vmul.f32 %v865_v30, %v865_v30  ;;  %v980_v47 = vmul.f32 %v874_v45, %v874_v45  ;;  %v984_v61 = vmul.f32 %v881_v58, %v881_v58  ;;  %v988_v62 = vmul.f32 %v886_v59, %v886_v59 }
  0x29   :  { %v992_v63 = vmul.f32 %v891_v2, %v891_v2  ;;  %v191_v39 = vsel %vm1453_vm0, %v159_v44, 0.0  ;;  %v192_v30 = vsel %vm1453_vm0, %v160_v1, 0.0  ;;  %v996_v34 = vadd.f32 %v149_v49, %v148_v17 }
  0x2a   :  { %v1000_v45 = vmul.f32 %v898_v7, %v898_v7  ;;  %v193_v33 = vadd.f32 %v192_v30, %v191_v39  ;;  %v194_v32 = vsel %vm1453_vm0, %v161_v5, 0.0  ;;  %v196_v59 = vsel %vm1453_vm0, %v162_v3, 0.0 }
  0x2b   :  { %v204_v15 = vsel %vm1453_vm0, %v163_v6, 0.0  ;;  %v205_v2 = vsel %vm1453_vm0, %v164_v22, 0.0  ;;  %v207_v53 = vsel %vm1453_vm0, %v165_v24, 0.0  ;;  %v209_v1 = vsel %vm1453_vm0, %v166_v28, 0.0 }
  0x2c   :  { %v195_v44 = vadd.f32 %v194_v32, %v193_v33  ;;  %v206_v41 = vadd.f32 %v205_v2, %v204_v15  ;;  %v217_v17 = vsel %vm1453_vm0, %v167_v29, 0.0  ;;  %v218_v49 = vsel %vm1453_vm0, %v168_v36, 0.0 }
  0x2d   :  { %v220_v39 = vsel %vm1453_vm0, %v169_v37, 0.0  ;;  %v222_v30 = vsel %vm1453_vm0, %v170_v42, 0.0  ;;  %v230_v5 = vsel %vm1453_vm0, %v171_v43, 0.0  ;;  %v219_v7 = vadd.f32 %v218_v49, %v217_v17 }
  0x2e   :  { %v197_v3 = vadd.f32 %v196_v59, %v195_v44  ;;  %v208_v6 = vadd.f32 %v207_v53, %v206_v41  ;;  %v231_v22 = vsel %vm1453_vm0, %v172_v48, 0.0  ;;  %v233_v32 = vsel %vm1453_vm0, %v173_v50, 0.0 }
  0x2f   :  { %v232_v24 = vadd.f32 %v231_v22, %v230_v5  ;;  %v235_v33 = vsel %vm1453_vm0, %v174_v54, 0.0  ;;  %v243_v15 = vsel %vm1453_vm0, %v175_v60, 0.0  ;;  %v221_v29 = vadd.f32 %v220_v39, %v219_v7 }
  0x30   :  { %v198_v2 = vrot.slane %v197_v3, 4  ;;  %v210_v28 = vadd.f32 %v209_v1, %v208_v6  ;;  %v244_v36 = vsel %vm1453_vm0, %v176_v0, 0.0  ;;  %v246_v59 = vsel %vm1453_vm0, %v177_v4, 0.0 }
  0x31   :  { %v234_v37 = vadd.f32 %v233_v32, %v232_v24  ;;  %v245_v42 = vadd.f32 %v244_v36, %v243_v15  ;;  %v248_v41 = vsel %vm1453_vm0, %v178_v16, 0.0  ;;  %v223_v48 = vadd.f32 %v222_v30, %v221_v29 }
  0x32   :  { %v199_v53 = vadd.f32 %v198_v2, %v197_v3  ;;  %v211_v43 = vrot.slane %v210_v28, 4  ;;  %v256_v50 = vsel %vm1453_vm0, %v179_v27, 0.0  ;;  %v257_v60 = vsel %vm1453_vm0, %v180_v20, 0.0 }
  0x33   :  { %v236_v44 = vadd.f32 %v235_v33, %v234_v37  ;;  %v247_v54 = vadd.f32 %v246_v59, %v245_v42  ;;  %v259_v1 = vsel %vm1453_vm0, %v181_v19, 0.0  ;;  %v224_v0 = vrot.slane %v223_v48, 4 }
  0x34   :  { %v200_v7 = vrot.slane %v199_v53, 2  ;;  %v212_v17 = vadd.f32 %v211_v43, %v210_v28  ;;  %v258_v49 = vadd.f32 %v257_v60, %v256_v50  ;;  %v261_v4 = vsel %vm1453_vm0, %v182_v38, 0.0 }
  0x35   :  { %v237_v39 = vrot.slane %v236_v44, 4  ;;  %v249_v5 = vadd.f32 %v248_v41, %v247_v54  ;;  %v269_v16 = vsel %vm1453_vm0, %v183_v46, 0.0  ;;  %v225_v6 = vadd.f32 %v224_v0, %v223_v48 }
  0x36   :  { %v201_v3 = vadd.f32 %v200_v7, %v199_v53  ;;  %v213_v30 = vrot.slane %v212_v17, 2  ;;  %v260_v27 = vadd.f32 %v259_v1, %v258_v49  ;;  %v270_v20 = vsel %vm1453_vm0, %v974_v31, 0.0 }
  0x37   :  { %v238_v22 = vadd.f32 %v237_v39, %v236_v44  ;;  %v250_v24 = vrot.slane %v249_v5, 4  ;;  %v272_v19 = vsel %vm1453_vm0, %v185_v18, 0.0  ;;  %v226_v15 = vrot.slane %v225_v6, 2 }
  0x38   :  { %v202_v32 = vrot.slane %v201_v3, 1  ;;  %v214_v33 = vadd.f32 %v213_v30, %v212_v17  ;;  %v262_v2 = vadd.f32 %v261_v4, %v260_v27  ;;  %v271_v38 = vadd.f32 %v270_v20, %v269_v16 }
  0x39   :  { %v239_v28 = vrot.slane %v238_v22, 2  ;;  %v251_v29 = vadd.f32 %v250_v24, %v249_v5  ;;  %v274_v46 = vsel %vm1453_vm0, %v980_v47, 0.0  ;;  %v227_v42 = vadd.f32 %v226_v15, %v225_v6 }
  0x3a   :  { %v203_v36 = vadd.f32 %v202_v32, %v201_v3  ;;  %v215_v37 = vrot.slane %v214_v33, 1  ;;  %v263_v59 = vrot.slane %v262_v2, 4  ;;  %v273_v43 = vadd.f32 %v272_v19, %v271_v38 }
  0x3b   :  { %v240_v41 = vadd.f32 %v239_v28, %v238_v22  ;;  %v252_v53 = vrot.slane %v251_v29, 2  ;;  %v282_v18 = vsel %vm1453_vm0, %v984_v61, 0.0  ;;  %v228_v48 = vrot.slane %v227_v42, 1 }
  0x3c   :  { %v216_v31 = vadd.f32 %v215_v37, %v214_v33  ;;  %v264_v50 = vadd.f32 %v263_v59, %v262_v2  ;;  %v283_v44 = vsel %vm1453_vm0, %v988_v62, 0.0  ;;  %v275_v1 = vadd.f32 %v274_v46, %v273_v43 }
  0x3d   :  { %v241_v54 = vrot.slane %v240_v41, 1  ;;  %v253_v60 = vadd.f32 %v252_v53, %v251_v29  ;;  %v284_v47 = vadd.f32 %v283_v44, %v282_v18  ;;  %v229_v7 = vadd.f32 %v228_v48, %v227_v42 }
  0x3e   :  { %v265_v17 = vrot.slane %v264_v50, 2  ;;  %v285_v0 = vsel %vm1453_vm0, %v992_v63, 0.0  ;;  %v287_v49 = vsel %vm1453_vm0, %v1000_v45, 0.0  ;;  %v276_v5 = vrot.slane %v275_v1, 4 }
  0x3f   :  { %v242_v39 = vadd.f32 %v241_v54, %v240_v41  ;;  %v254_v61 = vrot.slane %v253_v60, 1  ;;  %v286_v4 = vadd.f32 %v285_v0, %v284_v47  ;;  %v295_v3 = vmul.f32 0.03125, %v203_v36 }
  0x40   :  { %v266_v16 = vadd.f32 %v265_v17, %v264_v50  ;;  %v296_v30 = vmul.f32 0.03125, %v216_v31  ;;  %v297_v62 = vmul.f32 0.03125, %v229_v7  ;;  %v277_v27 = vadd.f32 %v276_v5, %v275_v1 }
  0x41   :  { %v255_v6 = vadd.f32 %v254_v61, %v253_v60  ;;  %v288_v22 = vadd.f32 %v287_v49, %v286_v4  ;;  %v298_v24 = vmul.f32 0.03125, %v242_v39  ;;  %v303_v19 = vmul.f32 %v910_v51, %v910_v51 }
  0x42   :  { %v267_v20 = vrot.slane %v266_v16, 1  ;;  %v304_v63 = vmul.f32 %v912_v55, %v912_v55  ;;  %v305_v45 = vmul.f32 %v914_v56, %v914_v56  ;;  %v278_v32 = vrot.slane %v277_v27, 2 }
  0x43   :  { %v289_v33 = vrot.slane %v288_v22, 4  ;;  %v299_v15 = vmul.f32 0.03125, %v255_v6  ;;  %v306_v2 = vmul.f32 %v916_v57, %v916_v57  ;;  %v1047_v28 = vmul.f32 0.03125, %v996_v34 }
  0x44   :  { %v268_v29 = vadd.f32 %v267_v20, %v266_v16  ;;  %v307_v38 = vmul.f32 %v926_v21, %v926_v21  ;;  %v308_v46 = vmul.f32 %v936_v35, %v936_v35  ;;  %v279_v36 = vadd.f32 %v278_v32, %v277_v27 }
  0x45   :  { %v290_v37 = vadd.f32 %v289_v33, %v288_v22  ;;  %v309_v42 = vmul.f32 %v966_v23, %v966_v23  ;;  %v311_v59 = vsub.f32 %v295_v3, %v303_v19  ;;  %v312_v53 = vsub.f32 %v296_v30, %v304_v63 }
  0x46   :  { %v300_v41 = vmul.f32 0.03125, %v268_v29  ;;  %v313_v43 = vsub.f32 %v297_v62, %v305_v45  ;;  %v314_v18 = vsub.f32 %v298_v24, %v306_v2  ;;  %v280_v31 = vrot.slane %v279_v36, 1 }
  0x47   :  { %v291_v34 = vrot.slane %v290_v37, 2  ;;  %v315_v48 = vsub.f32 %v299_v15, %v307_v38  ;;  %v1055_v50 = vadd.f32 1e-05, %v311_v59  ;;  %v1057_v54 = vadd.f32 1e-05, %v312_v53 }
  0x48   :  { %v316_v44 = vsub.f32 %v300_v41, %v308_v46  ;;  %v1059_v60 = vadd.f32 1e-05, %v313_v43  ;;  %v1061_v1 = vadd.f32 1e-05, %v314_v18  ;;  %v281_v47 = vadd.f32 %v280_v31, %v279_v36 }
  0x49   :  { %v292_v7 = vadd.f32 %v291_v34, %v290_v37  ;;  %v1063_v17 = vadd.f32 1e-05, %v315_v48  ;;  %623 = vrsqrt.f32 %v1055_v50  ;;  %v310_v61 = vmul.f32 %v1047_v28, %v1047_v28 }
  0x4a   :  { %v1066_v0 = vadd.f32 1e-05, %v316_v44  ;;  %625 = vrsqrt.f32 %v1057_v54  ;;  %v301_v39 = vmul.f32 0.03125, %v281_v47  ;;  %vm333_vm1 = vweird.f32 %v1055_v50 }
  0x4b   :  { %v293_v49 = vrot.slane %v292_v7, 1  ;;  %627 = vrsqrt.f32 %v1059_v60  ;;  %vm343_vm2 = vweird.f32 %v1057_v54  ;;  %vm353_vm3 = vweird.f32 %v1059_v60 }
  0x4c   :  { %629 = vrsqrt.f32 %v1061_v1  ;;  %v317_v4 = vsub.f32 %v301_v39, %v309_v42  ;;  %v415_v16 = vsub.f32 %v687_v9, %v910_v51  ;;  %v419_v3 = vsub.f32 %v697_v11, %v912_v55 }
  0x4d   :  { %v294_v5 = vadd.f32 %v293_v49, %v292_v7  ;;  %631 = vrsqrt.f32 %v1063_v17  ;;  %vm363_vm4 = vweird.f32 %v1061_v1  ;;  %v423_v27 = vsub.f32 %v707_v13, %v914_v56 }
  0x4e   :  { %633 = vrsqrt.f32 %v1066_v0  ;;  %v1082_v6 = vadd.f32 1e-05, %v317_v4  ;;  %v427_v22 = vsub.f32 %v744_v25, %v916_v57  ;;  %vm373_vm6 = vweird.f32 %v1063_v17 }
  0x4f   :  { %v624_v30 = vpop.eup %623  ;;  %v302_v62 = vmul.f32 0.03125, %v294_v5  ;;  %v431_v19 = vsub.f32 %v789_v40, %v926_v21  ;;  %v435_v63 = vsub.f32 %v817_v52, %v936_v35  ;;  %vm383_vm7 = vweird.f32 %v1066_v0 }
  0x50   :  { %v626_v24 = vpop.eup %625  ;;  %v328_v20 = vmul.f32 %v624_v30, %v1055_v50  ;;  %vm334_vm5 = vweird.f32 %v624_v30  ;;  %635 = vrsqrt.f32 %v1082_v6  ;;  %v439_v15 = vsub.f32 %v851_v8, %v966_v23 }
  0x51   :  { %v628_v45 = vpop.eup %627  ;;  %v318_v32 = vsub.f32 %v302_v62, %v310_v61  ;;  %v338_v33 = vmul.f32 %v626_v24, %v1057_v54  ;;  %vm344_vm8 = vweird.f32 %v626_v24  ;;  %v443_v46 = vsub.f32 %v881_v58, %v1047_v28  ;;  %vm1113_vm13 = vmor %vm333_vm1, %vm334_vm5 }
  0x52   :  { %v630_v2 = vpop.eup %629  ;;  %v329_v29 = vmul.f32 %v624_v30, %v328_v20  ;;  %v348_v38 = vmul.f32 %v628_v45, %v1059_v60  ;;  %vm354_vm9 = vweird.f32 %v628_v45  ;;  %vm393_vm11 = vweird.f32 %v1082_v6  ;;  %vm345_vm15 = vmor %vm343_vm2, %vm344_vm8 }
  0x53   :  { %v632_v36 = vpop.eup %631  ;;  %v1103_v37 = vadd.f32 1e-05, %v318_v32  ;;  %v339_v42 = vmul.f32 %v626_v24, %v338_v33  ;;  %v358_v59 = vmul.f32 %v630_v2, %v1061_v1  ;;  %vm364_vm10 = vweird.f32 %v630_v2  ;;  %vm1124_vm1 = vmor %vm353_vm3, %vm354_vm9 }
  0x54   :  { %v634_v41 = vpop.eup %633  ;;  %v330_v53 = vmul.f32 0.5, %v329_v29  ;;  %v349_v43 = vmul.f32 %v628_v45, %v348_v38  ;;  %v368_v18 = vmul.f32 %v632_v36, %v1063_v17  ;;  %vm374_vm12 = vweird.f32 %v632_v36  ;;  %vm1136_vm2 = vmor %vm363_vm4, %vm364_vm10 }
  0x55   :  { %v340_v31 = vmul.f32 0.5, %v339_v42  ;;  %v359_v34 = vmul.f32 %v630_v2, %v358_v59  ;;  %v378_v48 = vmul.f32 %v634_v41, %v1066_v0  ;;  %637 = vrsqrt.f32 %v1103_v37  ;;  %vm375_vm3 = vmor %vm373_vm6, %vm374_vm12 }
  0x56   :  { %v331_v44 = vsub.f32 1.5, %v330_v53  ;;  %v350_v47 = vmul.f32 0.5, %v349_v43  ;;  %v369_v7 = vmul.f32 %v632_v36, %v368_v18  ;;  %v636_v49 = vpop.eup %635  ;;  %vm384_vm14 = vweird.f32 %v634_v41 }
  0x57   :  { %v341_v61 = vsub.f32 1.5, %v340_v31  ;;  %v360_v5 = vmul.f32 0.5, %v359_v34  ;;  %v379_v4 = vmul.f32 %v634_v41, %v378_v48  ;;  %v388_v33 = vmul.f32 %v636_v49, %v1082_v6  ;;  %vm385_vm4 = vmor %vm383_vm7, %vm384_vm14 }
  0x58   :  { %v332_v62 = vmul.f32 %v624_v30, %v331_v44  ;;  %v351_v20 = vsub.f32 1.5, %v350_v47  ;;  %v370_v32 = vmul.f32 0.5, %v369_v7  ;;  %vm394_vm5 = vweird.f32 %v636_v49 }
  0x59   :  { %v342_v29 = vmul.f32 %v626_v24, %v341_v61  ;;  %v361_v38 = vsub.f32 1.5, %v360_v5  ;;  %v380_v42 = vmul.f32 0.5, %v379_v4  ;;  %vm403_vm0 = vweird.f32 %v1103_v37  ;;  %vm395_vm7 = vmor %vm393_vm11, %vm394_vm5 }
  0x5a   :  { %v1131_v54 = vsel %vm1113_vm13, %v624_v30, %v332_v62  ;;  %v352_v59 = vmul.f32 %v628_v45, %v351_v20  ;;  %v371_v60 = vsub.f32 1.5, %v370_v32  ;;  %v389_v43 = vmul.f32 %v636_v49, %v388_v33 }
  0x5b   :  { %v1140_v18 = vsel %vm345_vm15, %v626_v24, %v342_v29  ;;  %v362_v31 = vmul.f32 %v630_v2, %v361_v38  ;;  %v381_v34 = vsub.f32 1.5, %v380_v42  ;;  %v447_v30 = vmul.f32 %v415_v16, %v1131_v54  ;;  %v638_v1 = vpop.eup %637 }
  0x5c   :  { %v1153_v44 = vsel %vm1124_vm1, %v628_v45, %v352_v59  ;;  %v372_v24 = vmul.f32 %v632_v36, %v371_v60  ;;  %v390_v17 = vmul.f32 0.5, %v389_v43  ;;  %v451_v47 = vmul.f32 %v419_v3, %v1140_v18  ;;  %v1485_v60 = vld [vmem:[#allocation10_spill] sm:$0xff] }
  0x5d   :  { %v1166_v16 = vsel %vm1136_vm2, %v630_v2, %v362_v31  ;;  %v382_v7 = vmul.f32 %v634_v41, %v381_v34  ;;  %v398_v45 = vmul.f32 %v638_v1, %v1103_v37  ;;  %vm404_vm6 = vweird.f32 %v638_v1  ;;  %v1488_v31 = vld [vmem:[#allocation16_spill] sm:$0xff] }
  0x5e   :  { %v1169_v39 = vsel %vm375_vm3, %v632_v36, %v372_v24  ;;  %v391_v0 = vsub.f32 1.5, %v390_v17  ;;  %v455_v61 = vmul.f32 %v423_v27, %v1153_v44  ;;  %v459_v11 = vmul.f32 %v427_v22, %v1166_v16  ;;  %v534_v27 = vpop.permute.xlu2 %533  ;;  %vm1211_vm9 = vmor %vm403_vm0, %vm404_vm6 }
  0x5f   :  { %v1179_v3 = vsel %vm385_vm4, %v634_v41, %v382_v7  ;;  %v399_v2 = vmul.f32 %v638_v1, %v398_v45  ;;  %v463_v36 = vmul.f32 %v431_v19, %v1169_v39  ;;  %vm1480_vm8 = vcmask 130048  }
  0x60   :  { %v392_v5 = vmul.f32 %v636_v49, %v391_v0  ;;  %v467_v25 = vmul.f32 %v435_v63, %v1179_v3  ;;  %vm1483_vm10 = vmmov %vm1480_vm8  ;;  %v416_v8 = vsub.f32 %v692_v10, %v910_v51  ;;  %v424_v42 = vsub.f32 %v712_v14, %v914_v56  ;;  %v1487_v14 = vld [vmem:[#allocation13_spill] sm:$0xff] }
  0x61   :  { %v400_v41 = vmul.f32 0.5, %v399_v2  ;;  %vm1484_vm0 = vmmov %vm1480_vm8  ;;  %v428_v53 = vsub.f32 %v749_v26, %v916_v57  ;;  %v432_v10 = vsub.f32 %v1485_v60, %v926_v21  ;;  %v436_v43 = vsub.f32 %v1487_v14, %v936_v35  ;;  %v1500_v60 = vld [vmem:[#allocation12_spill] sm:$0xff] }
  0x62   :  { %v1197_v19 = vsel %vm395_vm7, %v636_v49, %v392_v5  ;;  %vm1486_vm11 = vmmov %vm1484_vm0  ;;  %v440_v34 = vsub.f32 %v1488_v31, %v966_v23  ;;  %v448_v26 = vmul.f32 %v416_v8, %v1131_v54  ;;  %v456_v0 = vmul.f32 %v424_v42, %v1153_v44  ;;  %v1496_v8 = vld [vmem:[#allocation7_spill] sm:$0xff]  ;;  %v1497_v42 = vld [vmem:[#allocation8_spill] sm:$0xff] }
  0x63   :  { %v401_v29 = vsub.f32 1.5, %v400_v41  ;;  %v471_v52 = vmul.f32 %v439_v15, %v1197_v19  ;;  %v420_v15 = vsub.f32 %v702_v12, %v912_v55  ;;  %vm1490_vm12 = vmmov %vm1484_vm0  ;;  %v468_v2 = vmul.f32 %v436_v43, %v1179_v3  ;;  %v1502_v43 = vld [vmem:[#allocation18_spill] sm:$0xff] }
  0x64   :  { %vm1491_vm13 = vmmov %vm1484_vm0  ;;  %v442_v31 = vsub.f32 %v1502_v43, %v966_v23 }
  0x65   :  { %v402_v37 = vmul.f32 %v638_v1, %v401_v29  ;;  %v452_v45 = vmul.f32 %v420_v15, %v1140_v18  ;;  %vm1492_vm14 = vmmov %vm1484_vm0  ;;  %v422_v15 = vsub.f32 %v1496_v8, %v912_v55 }
  0x66   :  { %vm1493_vm15 = vmmov %vm1484_vm0 }
  0x67   :  { %v1247_v17 = vsel %vm1211_vm9, %v638_v1, %v402_v37  ;;  %v460_v1 = vmul.f32 %v428_v53, %v1166_v16  ;;  %vm1494_vm1 = vmmov %vm1484_vm0  ;;  %v426_v37 = vsub.f32 %v1497_v42, %v914_v56  ;;  %v1518_v42 = vld [vmem:[#allocation17_spill] sm:$0xff] }
  0x68   :  { %vm1499_vm5 = vmmov %vm1484_vm0 }
  0x69   :  { %vm1504_vm2 = vmmov %vm1484_vm0 }
  0x6a   :  { %vm1505_vm3 = vmmov %vm1484_vm0 }
  0x6b   :  { %vm1506_vm4 = vmmov %vm1484_vm0 }
  0x6c   :  { %vm1507_vm6 = vmmov %vm1484_vm0 }
  0x6d   :  { %vm1508_vm7 = vmmov %vm1484_vm0 }
  0x6e   :  { %vm1510_vm9 = vmmov %vm1484_vm0 }
  0x74   :  { %v1149_v48 = vpop.permute.xlu0 %481  ;;  %v1162_v9 = vpop.permute.xlu1 %491 }
  0x75   :  { %v499_v13 = vmul.f32 %v1149_v48, %v447_v30  ;;  %v503_v22 = vmul.f32 %v1149_v48, %v451_v47  ;;  %v507_v6 = vmul.f32 %v1149_v48, %v455_v61  ;;  %v511_v4 = vmul.f32 %v1149_v48, %v459_v11  ;;  %v1489_v30 = vld [vmem:[#allocation19_spill] sm:$0xff] }
  0x76   :  { %v515_v62 = vmul.f32 %v1149_v48, %v463_v36  ;;  %v519_v20 = vmul.f32 %v1149_v48, %v467_v25  ;;  %v523_v59 = vmul.f32 %v1149_v48, %v471_v52  ;;  %v444_v24 = vsub.f32 %v1489_v30, %v1047_v28  ;;  %v539_v25 = vpop.permute.xlu2 %538 }
  0x77   :  { %v551_v40 = vadd.f32 %v534_v27, %v499_v13  ;;  %v555_v32 = vadd.f32 %v534_v27, %v503_v22  ;;  %v559_v33 = vadd.f32 %v534_v27, %v507_v6  ;;  %v563_v63 = vadd.f32 %v534_v27, %v511_v4 }
  0x78   :  { %v567_v50 = vadd.f32 %v534_v27, %v515_v62  ;;  %v571_v38 = vadd.f32 %v534_v27, %v519_v20  ;;  %v575_v47 = vadd.f32 %v534_v27, %v523_v59  ;;  %v475_v61 = vmul.f32 %v443_v46, %v1247_v17  ;;  %v1498_v59 = vld [vmem:[#allocation9_spill] sm:$0xff] }
  0x79   :  { %583 = vst.msk [vmem:[%s1432_s3] sm:$0xff] %vm1480_vm8, %v551_v40  ;;  %v464_v11 = vmul.f32 %v432_v10, %v1169_v39  ;;  %v472_v36 = vmul.f32 %v440_v34, %v1197_v19  ;;  %v476_v58 = vmul.f32 %v444_v24, %v1247_v17  ;;  %v430_v53 = vsub.f32 %v1498_v59, %v916_v57  ;;  %v1503_v34 = vld [vmem:[#allocation21_spill] sm:$0xff]  ;;  %vm1509_vm8 = vmmov %vm1484_vm0 }
  0x7a   :  { %587 = vst.msk [vmem:[%s1432_s3 + $0x20] sm:$0xff] %vm1483_vm10, %v555_v32  ;;  %v527_v5 = vmul.f32 %v1149_v48, %v475_v61  ;;  %v1495_v48 = vld [vmem:[#allocation6_spill] sm:$0xff]  ;;  %v434_v10 = vsub.f32 %v1500_v60, %v926_v21  ;;  %v446_v30 = vsub.f32 %v1503_v34, %v1047_v28  ;;  %vm1515_vm10 = vmmov %vm1484_vm0 }
  0x7b   :  { %591 = vst.msk [vmem:[%s1432_s3 + $0x40] sm:$0xff] %vm1484_vm0, %v559_v33 }
  0x7c   :  { %595 = vst.msk [vmem:[%s1432_s3 + $0x60] sm:$0xff] %vm1486_vm11, %v563_v63  ;;  %v487_v12 = vpop.permute.xlu0 %486  ;;  %v497_v7 = vpop.permute.xlu1 %496  ;;  %v579_v32 = vadd.f32 %v534_v27, %v527_v5  ;;  %v418_v27 = vsub.f32 %v1495_v48, %v910_v51  ;;  %v466_v61 = vmul.f32 %v434_v10, %v1169_v39  ;;  %vm1520_vm11 = vmmov %vm1484_vm0 }
  0x7d   :  { %599 = vst.msk [vmem:[%s1432_s3 + $0x80] sm:$0xff] %vm1490_vm12, %v567_v50  ;;  %v500_v46 = vmul.f32 %v487_v12, %v448_v26  ;;  %v504_v13 = vmul.f32 %v487_v12, %v452_v45  ;;  %v508_v22 = vmul.f32 %v487_v12, %v456_v0  ;;  %v512_v6 = vmul.f32 %v487_v12, %v460_v1  ;;  %vm1521_vm12 = vmmov %vm1484_vm0 }
  0x7e   :  { %603 = vst.msk [vmem:[%s1432_s3 + $0xa0] sm:$0xff] %vm1491_vm13, %v571_v38  ;;  %v516_v41 = vmul.f32 %v487_v12, %v464_v11  ;;  %v520_v4 = vmul.f32 %v487_v12, %v468_v2  ;;  %v524_v62 = vmul.f32 %v487_v12, %v472_v36  ;;  %v528_v40 = vmul.f32 %v487_v12, %v476_v58  ;;  %v1501_v12 = vld [vmem:[#allocation15_spill] sm:$0xff]  ;;  %vm1522_vm13 = vmmov %vm1484_vm0 }
  0x7f   :  { %607 = vst.msk [vmem:[%s1432_s3 + $0xc0] sm:$0xff] %vm1492_vm14, %v575_v47  ;;  %v552_v20 = vadd.f32 %v539_v25, %v500_v46  ;;  %v556_v33 = vadd.f32 %v539_v25, %v504_v13  ;;  %v560_v29 = vadd.f32 %v539_v25, %v508_v22  ;;  %v564_v52 = vadd.f32 %v539_v25, %v512_v6  ;;  %vm1523_vm14 = vmmov %vm1484_vm0 }
  0x80   :  { %v568_v63 = vadd.f32 %v539_v25, %v516_v41  ;;  %v572_v50 = vadd.f32 %v539_v25, %v520_v4  ;;  %v576_v49 = vadd.f32 %v539_v25, %v524_v62  ;;  %v580_v38 = vadd.f32 %v539_v25, %v528_v40  ;;  %611 = vst.msk [vmem:[%s1432_s3 + $0xe0] sm:$0xff] %vm1494_vm1, %v579_v32  ;;  %vm1525_vm1 = vmmov %vm1484_vm0 }
  0x81   :  { %584 = vst.msk [vmem:[%s1432_s3 + $0x8] sm:$0xff] %vm1493_vm15, %v552_v20  ;;  %v438_v14 = vsub.f32 %v1501_v12, %v936_v35  ;;  %v450_v24 = vmul.f32 %v418_v27, %v1131_v54  ;;  %v454_v26 = vmul.f32 %v422_v15, %v1140_v18  ;;  %v458_v47 = vmul.f32 %v426_v37, %v1153_v44  ;;  %v1516_v27 = vld [vmem:[#allocation11_spill] sm:$0xff]  ;;  %v1517_v15 = vld [vmem:[#allocation14_spill] sm:$0xff]  ;;  %v1519_v37 = vld [vmem:[#allocation20_spill] sm:$0xff] }
  0x82   :  { %588 = vst.msk [vmem:[%s1432_s3 + $0x28] sm:$0xff] %vm1499_vm5, %v556_v33  ;;  %v462_v45 = vmul.f32 %v430_v53, %v1166_v16  ;;  %v474_v11 = vmul.f32 %v442_v31, %v1197_v19  ;;  %v478_v2 = vmul.f32 %v446_v30, %v1247_v17  ;;  %v518_v5 = vmul.f32 %v497_v7, %v466_v61  ;;  %vm1524_vm15 = vmmov %vm1484_vm0 }
  0x83   :  { %592 = vst.msk [vmem:[%s1432_s3 + $0x48] sm:$0xff] %vm1504_vm2, %v560_v29  ;;  %v470_v1 = vmul.f32 %v438_v14, %v1179_v3  ;;  %v502_v36 = vmul.f32 %v497_v7, %v450_v24  ;;  %v506_v58 = vmul.f32 %v497_v7, %v454_v26  ;;  %v510_v46 = vmul.f32 %v497_v7, %v458_v47  ;;  %v1511_v29 = vld [vmem:[#allocation2_spill] sm:$0xff]  ;;  %vm1526_vm5 = vmmov %vm1484_vm0 }
  0x84   :  { %596 = vst.msk [vmem:[%s1432_s3 + $0x68] sm:$0xff] %vm1505_vm3, %v564_v52  ;;  %v549_v0 = vpop.permute.xlu1 %548  ;;  %v514_v13 = vmul.f32 %v497_v7, %v462_v45  ;;  %v526_v22 = vmul.f32 %v497_v7, %v474_v11  ;;  %v530_v6 = vmul.f32 %v497_v7, %v478_v2  ;;  %v1512_v52 = vld [vmem:[#allocation3_spill] sm:$0xff]  ;;  %v433_v8 = vsub.f32 %v1516_v27, %v926_v21  ;;  %vm1527_vm2 = vmmov %vm1484_vm0 }
  0x85   :  { %600 = vst.msk [vmem:[%s1432_s3 + $0x88] sm:$0xff] %vm1506_vm4, %v568_v63  ;;  %v522_v25 = vmul.f32 %v497_v7, %v470_v1  ;;  %v554_v41 = vadd.f32 %v549_v0, %v502_v36  ;;  %v558_v4 = vadd.f32 %v549_v0, %v506_v58  ;;  %v562_v62 = vadd.f32 %v549_v0, %v510_v46  ;;  %vm1528_vm3 = vmmov %vm1484_vm0 }
  0x86   :  { %604 = vst.msk [vmem:[%s1432_s3 + $0xa8] sm:$0xff] %vm1507_vm6, %v572_v50  ;;  %v566_v40 = vadd.f32 %v549_v0, %v514_v13  ;;  %v570_v20 = vadd.f32 %v549_v0, %v518_v5  ;;  %v578_v33 = vadd.f32 %v549_v0, %v526_v22  ;;  %v417_v7 = vsub.f32 %v1511_v29, %v910_v51  ;;  %v1513_v50 = vld [vmem:[#allocation4_spill] sm:$0xff]  ;;  %vm1529_vm4 = vmmov %vm1484_vm0 }
  0x87   :  { %608 = vst.msk [vmem:[%s1432_s3 + $0xc8] sm:$0xff] %vm1508_vm7, %v576_v49  ;;  %v574_v32 = vadd.f32 %v549_v0, %v522_v25  ;;  %v421_v63 = vsub.f32 %v1512_v52, %v912_v55  ;;  %v425_v49 = vsub.f32 %v1513_v50, %v914_v56  ;;  %v437_v51 = vsub.f32 %v1517_v15, %v936_v35  ;;  %vm1530_vm6 = vmmov %vm1484_vm0 }
  0x88   :  { %612 = vst.msk [vmem:[%s1432_s3 + $0xe8] sm:$0xff] %vm1509_vm8, %v580_v38  ;;  %v1514_v38 = vld [vmem:[#allocation5_spill] sm:$0xff]  ;;  %v441_v55 = vsub.f32 %v1518_v42, %v966_v23  ;;  %v445_v56 = vsub.f32 %v1519_v37, %v1047_v28  ;;  %v582_v35 = vadd.f32 %v549_v0, %v530_v6  ;;  %v544_v23 = vpop.permute.xlu0 %543  ;;  %v465_v28 = vmul.f32 %v433_v8, %v1169_v39  ;;  %vm1531_vm7 = vmmov %vm1484_vm0 }
  0x89   :  { %586 = vst.msk [vmem:[%s1432_s3 + $0x18] sm:$0xff] %vm1510_vm9, %v554_v41  ;;  %v429_v48 = vsub.f32 %v1514_v38, %v916_v57  ;;  %v449_v57 = vmul.f32 %v417_v7, %v1131_v54  ;;  %v453_v59 = vmul.f32 %v421_v63, %v1140_v18  ;;  %v457_v21 = vmul.f32 %v425_v49, %v1153_v44  ;;  %vm1532_vm8 = vmmov %vm1484_vm0 }
  0x8a   :  { %590 = vst.msk [vmem:[%s1432_s3 + $0x38] sm:$0xff] %vm1515_vm10, %v558_v4  ;;  %v469_v60 = vmul.f32 %v437_v51, %v1179_v3  ;;  %v473_v54 = vmul.f32 %v441_v55, %v1197_v19  ;;  %v477_v39 = vmul.f32 %v445_v56, %v1247_v17  ;;  %v517_v19 = vmul.f32 %v1162_v9, %v465_v28 }
  0x8b   :  { %594 = vst.msk [vmem:[%s1432_s3 + $0x58] sm:$0xff] %vm1484_vm0, %v562_v62  ;;  %v461_v53 = vmul.f32 %v429_v48, %v1166_v16  ;;  %v501_v18 = vmul.f32 %v1162_v9, %v449_v57  ;;  %v505_v44 = vmul.f32 %v1162_v9, %v453_v59  ;;  %v509_v16 = vmul.f32 %v1162_v9, %v457_v21 }
  0x8c   :  { %598 = vst.msk [vmem:[%s1432_s3 + $0x78] sm:$0xff] %vm1520_vm11, %v566_v40  ;;  %v521_v43 = vmul.f32 %v1162_v9, %v469_v60  ;;  %v525_v31 = vmul.f32 %v1162_v9, %v473_v54  ;;  %v569_v34 = vadd.f32 %v544_v23, %v517_v19  ;;  %v529_v30 = vmul.f32 %v1162_v9, %v477_v39 }
  0x8d   :  { %602 = vst.msk [vmem:[%s1432_s3 + $0x98] sm:$0xff] %vm1521_vm12, %v570_v20  ;;  %v513_v3 = vmul.f32 %v1162_v9, %v461_v53  ;;  %v553_v10 = vadd.f32 %v544_v23, %v501_v18  ;;  %v557_v12 = vadd.f32 %v544_v23, %v505_v44  ;;  %v561_v14 = vadd.f32 %v544_v23, %v509_v16 }
  0x8e   :  { %606 = vst.msk [vmem:[%s1432_s3 + $0xb8] sm:$0xff] %vm1522_vm13, %v574_v32  ;;  %v573_v24 = vadd.f32 %v544_v23, %v521_v43  ;;  %v577_v26 = vadd.f32 %v544_v23, %v525_v31  ;;  %v581_v47 = vadd.f32 %v544_v23, %v529_v30 }
  0x8f   :  { %610 = vst.msk [vmem:[%s1432_s3 + $0xd8] sm:$0xff] %vm1523_vm14, %v578_v33  ;;  %v565_v17 = vadd.f32 %v544_v23, %v513_v3 }
  0x90   :  { %614 = vst.msk [vmem:[%s1432_s3 + $0xf8] sm:$0xff] %vm1524_vm15, %v582_v35 }
  0x91   :  { %585 = vst.msk [vmem:[%s1432_s3 + $0x10] sm:$0xff] %vm1525_vm1, %v553_v10 }
  0x92   :  { %589 = vst.msk [vmem:[%s1432_s3 + $0x30] sm:$0xff] %vm1526_vm5, %v557_v12 }
  0x93   :  { %593 = vst.msk [vmem:[%s1432_s3 + $0x50] sm:$0xff] %vm1527_vm2, %v561_v14 }
  0x94   :  { %597 = vst.msk [vmem:[%s1432_s3 + $0x70] sm:$0xff] %vm1528_vm3, %v565_v17 }
  0x95   :  { %601 = vst.msk [vmem:[%s1432_s3 + $0x90] sm:$0xff] %vm1529_vm4, %v569_v34 }
  0x96   :  { %605 = vst.msk [vmem:[%s1432_s3 + $0xb0] sm:$0xff] %vm1530_vm6, %v573_v24 }
  0x97   :  { %609 = vst.msk [vmem:[%s1432_s3 + $0xd0] sm:$0xff] %vm1531_vm7, %v577_v26 }
  0x98   :  { %613 = vst.msk [vmem:[%s1432_s3 + $0xf0] sm:$0xff] %vm1532_vm8, %v581_v47 }

</bundles_post_ra>
